<compile_context>
chip_gen: v7x
topology: tpu7x:2x2x1
jax: 0.10.0
libtpu: 0.0.40
codegen_flags: <defaults>
</compile_context>

<pallas_src>
import jax
import jax.numpy as jnp
from jax.experimental import pallas as pl
from jax.experimental.pallas import tpu as pltpu


def _round_up(n: int, m: int) -> int:
    return ((n + m - 1) // m) * m


def fc_encoder_kernel(x_ref, w1_ref, b1_ref, w2_ref, b2_ref, o_ref):
    # x_ref: (tb, in_dim) f32 streamed from HBM; cast to bf16 on the VPU (hidden under the DMA).
    x = x_ref[...].astype(jnp.bfloat16)
    h = jnp.dot(x, w1_ref[...], preferred_element_type=jnp.float32)   # (tb, hid) f32 acc
    h = jnp.maximum(h + b1_ref[...], 0.0)                             # bias + ReLU in f32
    # dropout: eval-mode identity (deterministic)
    o = jnp.dot(h.astype(jnp.bfloat16), w2_ref[...],
                preferred_element_type=jnp.float32)                   # (tb, out_dim) f32 acc
    o = jnp.maximum(o + b2_ref[...], 0.0)                             # bias + ReLU in f32
    o_ref[...] = o.astype(o_ref.dtype)                                # narrow (out_dim-lane) store


def fc_encoder(x, w1, b1, w2, b2, *, block_b=1024, out_dtype=jnp.float32):
    """x: (B, feature_num, time_step) or (B, in_dim). Returns (B, out_dim) in `out_dtype`.

    w1: (in_dim, hid_dim), w2: (hid_dim, out_dim)  -- transposed vs nn.Linear.
    """
    assert block_b % 8 == 0, "batch tile must be sublane (8) aligned"
    B = x.shape[0]
    x2d = x.reshape(B, -1)                                 # == x.view(B, -1); contiguous, free
    in_dim = x2d.shape[1]
    hid_dim = w1.shape[1]
    out_dim = w2.shape[1]
    assert w1.shape == (in_dim, hid_dim), "w1 must be (in_dim, hid_dim) (transposed nn.Linear)"
    assert w2.shape == (hid_dim, out_dim), "w2 must be (hid_dim, out_dim) (transposed nn.Linear)"

    # Batch tiling: ragged grid (no padding pass). Ensure >= 2 grid steps when the batch is big
    # enough so the "parallel" axis can shard across v7x's 2 TensorCores; one extra step costs
    # ~0.35us on single-TC chips.  tb = ceil(B / n_steps) rounded to a sublane keeps padding
    # waste below 8 rows for awkward batch sizes (e.g. B=520).
    n_steps = pl.cdiv(B, block_b)
    if n_steps < 2 and B >= 16:
        n_steps = 2
    tb = _round_up(pl.cdiv(B, n_steps), 8)
    grid = (pl.cdiv(B, tb),)

    # Weights/biases are tiny and VMEM-resident (constant index_map): cast once in the wrapper.
    w1_bf = w1.astype(jnp.bfloat16)
    w2_bf = w2.astype(jnp.bfloat16)
    b1_2d = b1.reshape(1, hid_dim).astype(jnp.float32)
    b2_2d = b2.reshape(1, out_dim).astype(jnp.float32)

    out = pl.pallas_call(
        fc_encoder_kernel,
        out_shape=jax.ShapeDtypeStruct((B, out_dim), out_dtype),
        grid=grid,
        in_specs=[
            pl.BlockSpec((tb, in_dim), lambda i: (i, 0)),          # streamed x tile (native f32)
            pl.BlockSpec((in_dim, hid_dim), lambda i: (0, 0)),     # resident weights/biases
            pl.BlockSpec((1, hid_dim), lambda i: (0, 0)),
            pl.BlockSpec((hid_dim, out_dim), lambda i: (0, 0)),
            pl.BlockSpec((1, out_dim), lambda i: (0, 0)),
        ],
        out_specs=pl.BlockSpec((tb, out_dim), lambda i: (i, 0)),   # exact-width output, no pad
        compiler_params=pltpu.CompilerParams(
            dimension_semantics=("parallel",)),                    # megacore-shardable batch axis
    )(x2d, w1_bf, b1_2d, w2_bf, b2_2d)

    return out


def reference(x, w1, b1, w2, b2):
    """Pure-f32 reference matching the PyTorch module's forward (eval mode)."""
    B = x.shape[0]
    x2d = x.reshape(B, -1).astype(jnp.float32)
    h = jnp.maximum(x2d @ w1 + b1, 0.0)
    return jnp.maximum(h @ w2 + b2, 0.0)


if __name__ == "__main__":
    # Module hyperparameters (small, consistent with FCEncoder.__init__)
    feature_num = 4
    time_step = 8
    hid_dim = 32
    out_dim = 16
    batch = 2
    in_dim = feature_num * time_step * 1

    key = jax.random.PRNGKey(0)
    kx, kw1, kb1, kw2, kb2, kx2 = jax.random.split(key, 6)

    x = jax.random.normal(kx, (batch, feature_num, time_step), dtype=jnp.float32)
    # Deterministic parameter init (weights stored as (in, out) — transposed vs nn.Linear)
    w1 = jax.random.normal(kw1, (in_dim, hid_dim), dtype=jnp.float32) * 0.1
    b1 = jax.random.normal(kb1, (hid_dim,), dtype=jnp.float32) * 0.1
    w2 = jax.random.normal(kw2, (hid_dim, out_dim), dtype=jnp.float32) * 0.1
    b2 = jax.random.normal(kb2, (out_dim,), dtype=jnp.float32) * 0.1

    # Tolerance budget: x / h / w1 / w2 go through the MXU in bf16 (rel. err ~2^-8); at these
    # magnitudes the end-to-end deviation from the pure-f32 reference is well under 2e-2.
    ATOL = RTOL = 2e-2

    # --- Small-batch path (single grid step; 8-row sublane tile over a 2-row array). ---
    out = fc_encoder(x, w1, b1, w2, b2)
    jax.block_until_ready(out)
    ref = reference(x, w1, b1, w2, b2)
    assert out.shape == (batch, out_dim)
    assert jnp.allclose(out, ref, atol=ATOL, rtol=RTOL), "small-batch mismatch vs reference"

    # --- Larger, non-multiple batch exercises the ragged multi-step (megacore) streaming path. --
    big_batch = 1000
    xb = jax.random.normal(kx2, (big_batch, feature_num, time_step), dtype=jnp.float32)
    out_b = fc_encoder(xb, w1, b1, w2, b2, block_b=1024)
    jax.block_until_ready(out_b)
    ref_b = reference(xb, w1, b1, w2, b2)
    assert out_b.shape == (big_batch, out_dim)
    assert jnp.allclose(out_b, ref_b, atol=ATOL, rtol=RTOL), "big-batch mismatch vs reference"

    print("KERNEL_OK")
</pallas_src>

<mosaic_0001>
module attributes {stable_mosaic.version = 11 : i64} {
  func.func @fc_encoder_kernel(%arg0: i32, %arg1: memref<8x32xf32, #tpu.memory_space<vmem>>, %arg2: memref<32x32xbf16, #tpu.memory_space<vmem>>, %arg3: memref<1x32xf32, #tpu.memory_space<vmem>>, %arg4: memref<32x16xbf16, #tpu.memory_space<vmem>>, %arg5: memref<1x16xf32, #tpu.memory_space<vmem>>, %arg6: memref<8x16xf32, #tpu.memory_space<vmem>>) attributes {dimension_semantics = [#tpu.dimension_semantics<parallel>], iteration_bounds = array<i64: 1>, scalar_prefetch = 0 : i64, scratch_operands = 0 : i64, tpu.core_type = #tpu.core_type<tc>, window_params = [{transform_indices = @transform_0, window_bounds = array<i64: 8, 32>}, {pipeline_mode = #tpu.pipeline_mode<synchronous>, transform_indices = @transform_1, window_bounds = array<i64: 32, 32>}, {pipeline_mode = #tpu.pipeline_mode<synchronous>, transform_indices = @transform_2, window_bounds = array<i64: 1, 32>}, {pipeline_mode = #tpu.pipeline_mode<synchronous>, transform_indices = @transform_3, window_bounds = array<i64: 32, 16>}, {pipeline_mode = #tpu.pipeline_mode<synchronous>, transform_indices = @transform_4, window_bounds = array<i64: 1, 16>}, {transform_indices = @transform_5, window_bounds = array<i64: 8, 16>}]} {
    %c0 = arith.constant 0 : index
    %c0_0 = arith.constant 0 : index
    %0 = vector.load %arg1[%c0, %c0_0] : memref<8x32xf32, #tpu.memory_space<vmem>>, vector<8x32xf32>
    %1 = arith.truncf %0 : vector<8x32xf32> to vector<8x32xbf16>
    %c0_1 = arith.constant 0 : index
    %c0_2 = arith.constant 0 : index
    %2 = vector.load %arg2[%c0_1, %c0_2] : memref<32x32xbf16, #tpu.memory_space<vmem>>, vector<32x32xbf16>
    %cst = arith.constant dense<0.000000e+00> : vector<8x32xf32>
    %3 = tpu.matmul %1, %2, %cst {dimension_numbers = #tpu.dot_dimension_numbers<[1], [0], [0], [1], [0, 0, 1, 1], [], []>} : vector<8x32xbf16>, vector<32x32xbf16>, vector<8x32xf32> -> vector<8x32xf32>
    %c0_3 = arith.constant 0 : index
    %c0_4 = arith.constant 0 : index
    %4 = vector.load %arg3[%c0_3, %c0_4] : memref<1x32xf32, #tpu.memory_space<vmem>>, vector<1x32xf32>
    %5 = vector.broadcast %4 : vector<1x32xf32> to vector<8x32xf32>
    %6 = arith.addf %3, %5 : vector<8x32xf32>
    %cst_5 = arith.constant 0.000000e+00 : f32
    %7 = vector.broadcast %cst_5 : f32 to vector<8x32xf32>
    %8 = arith.maximumf %6, %7 : vector<8x32xf32>
    %9 = arith.truncf %8 : vector<8x32xf32> to vector<8x32xbf16>
    %c0_6 = arith.constant 0 : index
    %c0_7 = arith.constant 0 : index
    %10 = vector.load %arg4[%c0_6, %c0_7] : memref<32x16xbf16, #tpu.memory_space<vmem>>, vector<32x16xbf16>
    %cst_8 = arith.constant dense<0.000000e+00> : vector<8x16xf32>
    %11 = tpu.matmul %9, %10, %cst_8 {dimension_numbers = #tpu.dot_dimension_numbers<[1], [0], [0], [1], [0, 0, 1, 1], [], []>} : vector<8x32xbf16>, vector<32x16xbf16>, vector<8x16xf32> -> vector<8x16xf32>
    %c0_9 = arith.constant 0 : index
    %c0_10 = arith.constant 0 : index
    %12 = vector.load %arg5[%c0_9, %c0_10] : memref<1x16xf32, #tpu.memory_space<vmem>>, vector<1x16xf32>
    %13 = vector.broadcast %12 : vector<1x16xf32> to vector<8x16xf32>
    %14 = arith.addf %11, %13 : vector<8x16xf32>
    %cst_11 = arith.constant 0.000000e+00 : f32
    %15 = vector.broadcast %cst_11 : f32 to vector<8x16xf32>
    %16 = arith.maximumf %14, %15 : vector<8x16xf32>
    %c0_12 = arith.constant 0 : index
    %c0_13 = arith.constant 0 : index
    %17 = vector.load %arg6[%c0_12, %c0_13] : memref<8x16xf32, #tpu.memory_space<vmem>>, vector<8x16xf32>
    tpu.vector_store %arg6[%c0_12, %c0_13], %16 {strides = array<i32>} : memref<8x16xf32, #tpu.memory_space<vmem>>, vector<8x16xf32>,
    return
  }
  func.func @transform_0(%arg0: i32) -> (i32, i32) {
    %c0_i32 = arith.constant 0 : i32
    %c0_i32_0 = arith.constant 0 : i32
    return %arg0, %c0_i32 : i32, i32
  }
  func.func @transform_1(%arg0: i32) -> (i32, i32) {
    %c0_i32 = arith.constant 0 : i32
    %c0_i32_0 = arith.constant 0 : i32
    %c0_i32_1 = arith.constant 0 : i32
    return %c0_i32, %c0_i32_0 : i32, i32
  }
  func.func @transform_2(%arg0: i32) -> (i32, i32) {
    %c0_i32 = arith.constant 0 : i32
    %c0_i32_0 = arith.constant 0 : i32
    %c0_i32_1 = arith.constant 0 : i32
    return %c0_i32, %c0_i32_0 : i32, i32
  }
  func.func @transform_3(%arg0: i32) -> (i32, i32) {
    %c0_i32 = arith.constant 0 : i32
    %c0_i32_0 = arith.constant 0 : i32
    %c0_i32_1 = arith.constant 0 : i32
    return %c0_i32, %c0_i32_0 : i32, i32
  }
  func.func @transform_4(%arg0: i32) -> (i32, i32) {
    %c0_i32 = arith.constant 0 : i32
    %c0_i32_0 = arith.constant 0 : i32
    %c0_i32_1 = arith.constant 0 : i32
    return %c0_i32, %c0_i32_0 : i32, i32
  }
  func.func @transform_5(%arg0: i32) -> (i32, i32) {
    %c0_i32 = arith.constant 0 : i32
    %c0_i32_0 = arith.constant 0 : i32
    return %arg0, %c0_i32 : i32, i32
  }
}

</mosaic_0001>

<bundles_post_ra>
// kernel: tpu_custom_call.1
= control target key start
LH: loop header
LB: loop body
LE: loop exit
PB: predicated region body
PF: predicated region fallthrough
CT: control target
= control target key end

     0   :  { %10 = vsyncpa [#allocation3], 0  ;;  %v241_v1 = vmov 0.0   ;;  %vm242_vm0 = vmmov 0   ;;  %vm47_vm1 = vcmask 261120   ;;  %vm160_vm2 = vcmask 130048   ;;  %s309_s0 = inlined_call_operand.vmem [shape: f32[2,32], index: 0, kind: input, shape index: {}]   ;;  %s310_s1 = inlined_call_operand.vmem [shape: bf16[32,32], index: 1, kind: input, shape index: {}]   ;;  %s311_s2 = inlined_call_operand.vmem [shape: f32[1,32], index: 2, kind: input, shape index: {}]   ;;  %s312_s3 = inlined_call_operand.vmem [shape: bf16[32,16], index: 3, kind: input, shape index: {}]   ;;  %s313_s4 = inlined_call_operand.vmem [shape: f32[1,16], index: 4, kind: input, shape index: {}]   ;;  %s314_s5 = inlined_call_operand.hbm [shape: f32[2,16], index: 5, kind: output, shape index: {}]  }
   0x1   :  { %v213_v0 = vld [vmem:[%s310_s1] sm:$0xff]   ;;  %192 = vmatprep.subr.bf16.mxu0 %v241_v1  ;;  %200 = vmatprep.subr.bf16.mxu1 %v241_v1  ;;  %v214_v2 = vld [vmem:[%s310_s1 + $0x8] sm:$0xff]  }
   0x2   :  { %193 = vmatpush3.bf16.msra.mxu0 %v213_v0  ;;  %v22_v3 = vld [vmem:[%s309_s0] sm:$0xff]  ;;  %196 = vmatprep.mubr.msk.bf16.mxu0 %vm242_vm0, %v241_v1  ;;  %v216_v6 = vld [vmem:[%s312_s3 + $0x8] sm:$0xff]  }
   0x3   :  { %194 = vmatprep.subr.bf16.mxu0 %v241_v1  ;;  %204 = vmatprep.mubr.msk.bf16.mxu1 %vm242_vm0, %v241_v1  ;;  %v23_v4 = vpack.c.bf16 %v22_v3, %v22_v3  ;;  %v215_v5 = vld [vmem:[%s312_s3] sm:$0xff]  }
   0x4   :  { %201 = vmatpush3.bf16.msra.mxu1 %v215_v5  ;;  %v178_v7 = vld [vmem:[%s311_s2] ss:$0 sm:$0xff] }
   0x5   :  { %202 = vmatprep.subr.bf16.mxu1 %v241_v1  ;;  %v182_v15 = vld [vmem:[%s313_s4] ss:$0 sm:$0xff] }
   0x6   :  { %195 = vmatpush3.bf16.msra.mxu0 %v214_v2 }
   0x8   :  { %203 = vmatpush3.bf16.msra.mxu1 %v216_v6 }
   0x9   :  { %197 = vmatmul.mubr.msk.bf16.vlgmr.msra.gmra.mrb[0].mxu0 %vm47_vm1, %v23_v4 }
  0xdc   :  { %v85_v8 = vpop.f32.mrb[0].mxu0 }
  0xdd   :  { %v86_v9 = vadd.f32 %v178_v7, %v85_v8  ;;  %v198_v10 = vpop.f32.mrb[1].mxu0 }
  0xde   :  { %v88_v11 = vpop.f32.mrb[2].mxu0 }
  0xdf   :  { %v91_v12 = vmax.f32 %v86_v9, 0.0  ;;  %v199_v13 = vpop.f32.mrb[3].mxu0 }
  0xe1   :  { %v92_v14 = vpack.c.bf16 %v91_v12, %v91_v12 }
  0xe3   :  { %205 = vmatmul.mubr.msk.bf16.vlgmr.msra.gmra.mrb[0].mxu1 %vm47_vm1, %v92_v14 }
 0x1b6   :  { %v153_v16 = vpop.f32.mrb[0].mxu1 }
 0x1b7   :  { %v154_v17 = vadd.f32 %v182_v15, %v153_v16  ;;  %v206_v18 = vpop.f32.mrb[1].mxu1 }
 0x1b8   :  { %v156_v19 = vpop.f32.mrb[2].mxu1 }
 0x1b9   :  { %v159_v20 = vmax.f32 %v154_v17, 0.0  ;;  %v207_v21 = vpop.f32.mrb[3].mxu1 }
 0x1bb   :  { %161 = vst.msk [vmem:[#allocation2] sm:$0xff] %vm160_vm2, %v159_v20 }
 0x1bc   :  { %166 = vsyncadd [#allocation3], 96  ;;  %s243_s2 = smov [#allocation2]  }
 0x1bd   :  { %s167_s3 = sshll.u32 %s243_s2, 4  ;;  %s168_s3 = int_to_ptr.vmem [resolvable:$true] %s167_s3 }
 0x1be   :  { %s217_s30 = scalar_lea.vmem %s168_s3, 32  ;;  %s221_s6 = scalar_lea.vmem %s168_s3, 128 }
 0x1bf   :  { %p218_p0 = scmp.ne.s32.totalorder %s168_s3, %s217_s30  ;;  %p222_p1 = scmp.lt.s32.totalorder %s168_s3, %s168_s3 }
 0x1c0   :  { %p223_p2 = scmp.lt.s32.totalorder %s221_s6, %s217_s30 }
 0x1c2   :  { %p224_p3 = por %p223_p2, %p222_p1 }
 0x1c4   :  { %p225_p4 = pnand %p224_p3, %p218_p0 }
 0x1c6   :  { %228 = shalt.err (!%p225_p4)
}
 0x1c7   :  { %s229_s8 = scalar_lea.hbm %s314_s5, 32 }
 0x1c8   :  { %p230_p5 = scmp.ne.s32.totalorder %s314_s5, %s229_s8  ;;  %p233_p6 = scmp.lt.u32.totalorder %s229_s8, %s314_s5 }
 0x1ca   :  { %p235_p7 = pnand %p233_p6, %p230_p5 }
 0x1cc   :  { %238 = shalt.err (!%p235_p7)
}
 0x1cd   :  { %s244_s13 = smov 32   ;;  %s245_s14 = smov 2  }
 0x1ce   :  { %173 = dma.vmem_to_hbm [thread:$0]  %s168_s3, 32, %s314_s5, [#allocation3], %s244_s13, %s244_s13, %s245_s14  }
 0x1cf   :  { %239 = dma.done.wait [#allocation3], 128  }
 0x1d0   :  { %240 = vsyncadd [#allocation3], 4294967168 }
 0x1d1   :  { %177 = vsyncpa [#allocation3], 1 }

</bundles_post_ra>
